<compile_context>
chip_gen: v5e
topology: v5e:2x2
jax: 0.10.0
libtpu: 0.0.40
codegen_flags: <defaults>
</compile_context>

<pallas_src>
import jax
import jax.numpy as jnp
from jax.experimental import pallas as pl
from jax.experimental.pallas import tpu as pltpu

LANE = 128
MAX_ROW_TILE = 2048  # 2048 x 128 x 4B = 1 MiB per input per pipeline buffer


def _round_up(x: int, m: int) -> int:
    return -(-x // m) * m


def _make_mse_kernel(row_tile: int, rows_valid: int, need_mask: bool,
                     inv_n: float):
    """Builds the kernel with static tiling parameters baked in."""

    def kernel(x_ref, y_ref, o_ref, acc_ref):
        i = pl.program_id(0)

        @pl.when(i == 0)
        def _init():
            acc_ref[...] = jnp.zeros_like(acc_ref)

        d = x_ref[...].astype(jnp.float32) - y_ref[...].astype(jnp.float32)
        sq = d * d

        if need_mask:
            # Mask rows past the valid row count (only the last, ragged block
            # can contain out-of-range rows with unspecified contents).
            row_ids = i * row_tile + jax.lax.broadcasted_iota(
                jnp.int32, (row_tile, LANE), 0)
            sq = jnp.where(row_ids < rows_valid, sq, 0.0)

        # Fold (row_tile, 128) into the (8, 128) vreg-shaped accumulator:
        # pure VPU elementwise adds, no per-step XLU reduce, no SMEM RMW.
        acc_ref[...] += jnp.sum(sq.reshape(row_tile // 8, 8, LANE), axis=0)

        @pl.when(i == pl.num_programs(0) - 1)
        def _finalize():
            # Single full reduction + scale by 1/N, once, at the end.
            o_ref[0, 0] = jnp.sum(acc_ref[...]) * inv_n

    return kernel


def criteron_mse(inp: jax.Array, target: jax.Array) -> jax.Array:
    """Equivalent of CriteronMSE.forward: mean((input - target)**2), in f32."""
    assert inp.shape == target.shape, (inp.shape, target.shape)
    n_elems = int(inp.size)

    x = inp.reshape(-1)
    y = target.reshape(-1)

    # Only pad when the element count is not a multiple of the lane width
    # (128). The common aligned case does zero extra HBM traffic.
    if n_elems % LANE != 0:
        # TODO(synk): this pad materializes a copy of the flattened arrays;
        # it only fires for non-128-aligned element counts.
        pad = LANE - (n_elems % LANE)
        x = jnp.pad(x, (0, pad))
        y = jnp.pad(y, (0, pad))

    rows = x.size // LANE
    x2d = x.reshape(rows, LANE)
    y2d = y.reshape(rows, LANE)

    # Row tile: as large as possible (up to MAX_ROW_TILE), multiple of 8 so the
    # (8, 128) accumulator fold is exact and loads stay unmasked for bf16 too.
    row_tile = min(MAX_ROW_TILE, _round_up(rows, 8))
    num_blocks = -(-rows // row_tile)
    need_mask = (rows % row_tile) != 0
    inv_n = 1.0 / float(n_elems)

    kernel = _make_mse_kernel(row_tile, rows, need_mask, inv_n)

    out = pl.pallas_call(
        kernel,
        out_shape=jax.ShapeDtypeStruct((1, 1), jnp.float32),
        grid_spec=pltpu.PrefetchScalarGridSpec(
            num_scalar_prefetch=0,
            grid=(num_blocks,),
            in_specs=[
                pl.BlockSpec((row_tile, LANE), lambda i: (i, 0)),  # x tile
                pl.BlockSpec((row_tile, LANE), lambda i: (i, 0)),  # y tile
            ],
            out_specs=pl.BlockSpec(
                (1, 1), lambda i: (0, 0), memory_space=pltpu.SMEM
            ),
            scratch_shapes=[pltpu.VMEM((8, LANE), jnp.float32)],
        ),
        compiler_params=pltpu.CompilerParams(
            dimension_semantics=("arbitrary",)
        ),
    )(x2d, y2d)

    return out[0, 0]  # float32, like torch's promoted-dtype MSELoss output


if __name__ == "__main__":
    key = jax.random.PRNGKey(0)
    k1, k2, k3, k4 = jax.random.split(key, 4)

    # shapes consistent with a typical NCHW prediction / target pair
    x = jax.random.normal(k1, (2, 4, 16, 16), dtype=jnp.float32)
    t = jax.random.normal(k2, (2, 4, 16, 16), dtype=jnp.float32)

    loss = criteron_mse(x, t)
    jax.block_until_ready(loss)
    ref = jnp.mean((x - t) ** 2)
    assert jnp.allclose(loss, ref, rtol=1e-5, atol=1e-6), (loss, ref)

    # ragged / non-128-aligned case exercises the in-kernel tail mask
    x2 = jax.random.normal(k3, (3, 5, 7, 11), dtype=jnp.float32)
    t2 = jax.random.normal(k4, (3, 5, 7, 11), dtype=jnp.float32)
    loss2 = criteron_mse(x2, t2)
    jax.block_until_ready(loss2)
    ref2 = jnp.mean((x2 - t2) ** 2)
    assert jnp.allclose(loss2, ref2, rtol=1e-5, atol=1e-6), (loss2, ref2)

    print("KERNEL_OK")
</pallas_src>

<mosaic_0001>
module attributes {stable_mosaic.version = 11 : i64} {
  func.func @kernel(%arg0: i32, %arg1: memref<16x128xf32, #tpu.memory_space<vmem>>, %arg2: memref<16x128xf32, #tpu.memory_space<vmem>>, %arg3: memref<1x1xf32, #tpu.memory_space<smem>>, %arg4: memref<8x128xf32, #tpu.memory_space<vmem>>) attributes {dimension_semantics = [#tpu.dimension_semantics<arbitrary>], iteration_bounds = array<i64: 1>, scalar_prefetch = 0 : i64, scratch_operands = 1 : i64, tpu.core_type = #tpu.core_type<tc>, window_params = [{transform_indices = @transform_0, window_bounds = array<i64: 16, 128>}, {transform_indices = @transform_1, window_bounds = array<i64: 16, 128>}, {transform_indices = @transform_2, window_bounds = array<i64: 1, 1>}]} {
    %c0_i32 = arith.constant 0 : i32
    %0 = arith.cmpi eq, %arg0, %c0_i32 : i32
    %1 = arith.extui %0 : i1 to i32
    %c0_i32_0 = arith.constant 0 : i32
    %2 = arith.cmpi ne, %1, %c0_i32_0 : i32
    scf.if %2 {
      %cst_10 = arith.constant 0.000000e+00 : f32
      %15 = vector.broadcast %cst_10 : f32 to vector<8x128xf32>
      %c0_11 = arith.constant 0 : index
      %c0_12 = arith.constant 0 : index
      %16 = vector.load %arg4[%c0_11, %c0_12] : memref<8x128xf32, #tpu.memory_space<vmem>>, vector<8x128xf32>
      tpu.vector_store %arg4[%c0_11, %c0_12], %15 {strides = array<i32>} : memref<8x128xf32, #tpu.memory_space<vmem>>, vector<8x128xf32>,
    } else {
    }
    %c0 = arith.constant 0 : index
    %c0_1 = arith.constant 0 : index
    %3 = vector.load %arg1[%c0, %c0_1] : memref<16x128xf32, #tpu.memory_space<vmem>>, vector<16x128xf32>
    %c0_2 = arith.constant 0 : index
    %c0_3 = arith.constant 0 : index
    %4 = vector.load %arg2[%c0_2, %c0_3] : memref<16x128xf32, #tpu.memory_space<vmem>>, vector<16x128xf32>
    %5 = arith.subf %3, %4 : vector<16x128xf32>
    %6 = arith.mulf %5, %5 : vector<16x128xf32>
    %c0_4 = arith.constant 0 : index
    %c0_5 = arith.constant 0 : index
    %7 = vector.load %arg4[%c0_4, %c0_5] : memref<8x128xf32, #tpu.memory_space<vmem>>, vector<8x128xf32>
    %8 = vector.shape_cast %6 : vector<16x128xf32> to vector<2x8x128xf32>
    %cst = arith.constant dense<0.000000e+00> : vector<8x128xf32>
    %9 = vector.multi_reduction <add>, %8, %cst [0] : vector<2x8x128xf32> to vector<8x128xf32>
    %10 = arith.addf %7, %9 : vector<8x128xf32>
    %c0_6 = arith.constant 0 : index
    %c0_7 = arith.constant 0 : index
    %11 = vector.load %arg4[%c0_6, %c0_7] : memref<8x128xf32, #tpu.memory_space<vmem>>, vector<8x128xf32>
    tpu.vector_store %arg4[%c0_6, %c0_7], %10 {strides = array<i32>} : memref<8x128xf32, #tpu.memory_space<vmem>>, vector<8x128xf32>,
    %c0_i32_8 = arith.constant 0 : i32
    %12 = arith.cmpi eq, %arg0, %c0_i32_8 : i32
    %13 = arith.extui %12 : i1 to i32
    %c0_i32_9 = arith.constant 0 : i32
    %14 = arith.cmpi ne, %13, %c0_i32_9 : i32
    scf.if %14 {
      %c0_10 = arith.constant 0 : index
      %c0_11 = arith.constant 0 : index
      %15 = vector.load %arg4[%c0_10, %c0_11] : memref<8x128xf32, #tpu.memory_space<vmem>>, vector<8x128xf32>
      %16 = vector.shape_cast %15 : vector<8x128xf32> to vector<1x8x128xf32>
      %cst_12 = arith.constant dense<0.000000e+00> : vector<1xf32>
      %17 = vector.multi_reduction <add>, %16, %cst_12 [1, 2] : vector<1x8x128xf32> to vector<1xf32>
      %18 = vector.shape_cast %17 : vector<1xf32> to vector<1x1x1xf32>
      %19 = vector.extract %18[0, 0, 0] : f32 from vector<1x1x1xf32>
      %cst_13 = arith.constant 4.8828125E-4 : f32
      %20 = arith.mulf %19, %cst_13 : f32
      %c0_14 = arith.constant 0 : index
      %c0_15 = arith.constant 0 : index
      %21 = memref.load %arg3[%c0_14, %c0_15] : memref<1x1xf32, #tpu.memory_space<smem>>
      memref.store %20, %arg3[%c0_14, %c0_15] : memref<1x1xf32, #tpu.memory_space<smem>>
    } else {
    }
    return
  }
  func.func @transform_0(%arg0: i32) -> (i32, i32) {
    %c0_i32 = arith.constant 0 : i32
    %c0_i32_0 = arith.constant 0 : i32
    return %arg0, %c0_i32 : i32, i32
  }
  func.func @transform_1(%arg0: i32) -> (i32, i32) {
    %c0_i32 = arith.constant 0 : i32
    %c0_i32_0 = arith.constant 0 : i32
    return %arg0, %c0_i32 : i32, i32
  }
  func.func @transform_2(%arg0: i32) -> (i32, i32) {
    %c0_i32 = arith.constant 0 : i32
    %c0_i32_0 = arith.constant 0 : i32
    %c0_i32_1 = arith.constant 0 : i32
    return %c0_i32, %c0_i32_0 : i32, i32
  }
}

</mosaic_0001>

<bundles_post_ra>
// kernel: tpu_custom_call.1
= control target key start
LH: loop header
LB: loop body
LE: loop exit
PB: predicated region body
PF: predicated region fallthrough
CT: control target
= control target key end

     0   :  { %7 = vsyncpa [#allocation4], 0  ;;  %s196_s0 = inlined_call_operand.hbm [shape: f32[16,128], index: 0, kind: input, shape index: {}]   ;;  %s197_s1 = inlined_call_operand.hbm [shape: f32[16,128], index: 1, kind: input, shape index: {}]   ;;  %s198_s2 = inlined_call_operand.hbm [shape: f32[1,1], index: 2, kind: output, shape index: {}]  }
   0x1   :  { %8 = vsyncpa [#allocation7], 0 }
   0x2   :  { %9 = vsyncpa [#allocation5], 0  ;;  %s14_s11 = sshll.u32 %s196_s0, 4  ;;  %s167_s12 = smov [#allocation3]   ;;  %s15_s11 = int_to_ptr.hbm [resolvable:$true] %s14_s11 }
   0x3   :  { %s16_s13 = sshll.u32 %s167_s12, 4  ;;  %s27_s16 = sshll.u32 %s197_s1, 4  ;;  %s17_s13 = int_to_ptr.vmem [resolvable:$true] %s16_s13  ;;  %s28_s16 = int_to_ptr.hbm [resolvable:$true] %s27_s16 }
   0x4   :  { %s168_s17 = smov 128   ;;  %s169_s18 = smov 8  }
   0x5   :  { %22 = dma.hbm_to_vmem [thread:$0]  %s15_s11, 256, %s17_s13, [#allocation4], %s168_s17, %s168_s17, %s169_s18  }
   0x6   :  { %s170_s19 = smov [#allocation6]  }
   0x7   :  { %s29_s20 = sshll.u32 %s170_s19, 4  ;;  %s30_s20 = int_to_ptr.vmem [resolvable:$true] %s29_s20 }
   0x8   :  { %35 = dma.hbm_to_vmem [thread:$0]  %s28_s16, 256, %s30_s20, [#allocation7], %s168_s17, %s168_s17, %s169_s18  }
   0x9   :  { %161 = dma.done.wait [#allocation4], 256  }
   0xa   :  { %162 = vsyncadd [#allocation4], 4294967040 }
   0xb   :  { %163 = dma.done.wait [#allocation7], 256  }
   0xc   :  { %164 = vsyncadd [#allocation7], 4294967040  ;;  %v49_v0 = vld [vmem:[#allocation3] sm:$0xff]  ;;  %v50_v1 = vld [vmem:[#allocation3 + $0x8] sm:$0xff]  ;;  %s82_s21 = sshll.u32 %s198_s2, 4  ;;  %s171_s24 = smov [#allocation8]   ;;  %s83_s21 = int_to_ptr.hbm [resolvable:$true] %s82_s21 }
   0xd   :  { %v51_v2 = vld [vmem:[#allocation6] sm:$0xff]  ;;  %v52_v3 = vld [vmem:[#allocation6 + $0x8] sm:$0xff] }
   0xe   :  { %v53_v4 = vsub.f32 %v49_v0, %v51_v2  ;;  %v54_v5 = vsub.f32 %v50_v1, %v52_v3 }
  0x10   :  { %v55_v6 = vmul.f32 %v53_v4, %v53_v4  ;;  %v56_v7 = vmul.f32 %v54_v5, %v54_v5 }
  0x12   :  { %v58_v8 = vadd.f32 %v56_v7, %v55_v6 }
  0x14   :  { %65 = vadd.xlane.f32.xlu0 %v58_v8 }
  0x87   :  { %v66_v9 = vpop.xlane.xlu0 %65 }
  0x88   :  { %v67_v10 = vrot.slane %v66_v9, 4 }
  0x8a   :  { %v68_v11 = vadd.f32 %v67_v10, %v66_v9 }
  0x8c   :  { %v69_v12 = vrot.slane %v68_v11, 2 }
  0x8e   :  { %v70_v13 = vadd.f32 %v69_v12, %v68_v11 }
  0x90   :  { %v71_v14 = vrot.slane %v70_v13, 1 }
  0x92   :  { %v72_v15 = vadd.f32 %v71_v14, %v70_v13 }
  0x94   :  { %94 = vpush %v72_v15 }
  0xc5   :  { %s95_s22 = spop %94 }
  0xc6   :  { %s74_s23 = smul.f32 0.00048828125, %s95_s22 }
  0xc8   :  { %76 = sst [smem:[#allocation8]] %s74_s23 }
  0xc9   :  { %85 = dma.smem_to_hbm %s171_s24, 16, %s83_s21, [#allocation5]  }
  0xca   :  { %165 = dma.done.wait [#allocation5], 16  }
  0xcb   :  { %166 = vsyncadd [#allocation5], 4294967280 }
  0xcc   :  { %90 = sfence }
  0xcd   :  { %91 = vsyncpa [#allocation4], 1 }
  0xce   :  { %92 = vsyncpa [#allocation7], 1 }
  0xcf   :  { %93 = vsyncpa [#allocation5], 1 }

</bundles_post_ra>
